<compile_context>
chip_gen: v7x
topology: tpu7x:2x2x1
jax: 0.10.0
libtpu: 0.0.40
codegen_flags: <defaults>
</compile_context>

<pallas_src>
import jax
import jax.numpy as jnp
from jax.experimental import pallas as pl
from jax.experimental.pallas import tpu as pltpu


def _disparity_kernel(x_ref, w_ref, b_ref, o_ref):
    # x_ref: (1, C, T) activation tile (input dtype)
    # w_ref: (2, C)    weights (same dtype as x), resident across grid steps
    # b_ref: (2, 1)    bias (f32), resident across grid steps
    # o_ref: (1, 2, T) output tile
    x = x_ref[0]                                                      # (C, T)
    # MXU matmul with f32 accumulation; memory-bound kernel so the tiny M=2
    # matmul is effectively free and keeps the VPU unloaded for the epilogue.
    y = jnp.dot(w_ref[...], x, preferred_element_type=jnp.float32)    # (2, T)
    y = jax.nn.sigmoid(y + b_ref[...]) * jnp.float32(0.3)
    o_ref[0] = y.astype(o_ref.dtype)


def _round_up(x, m):
    return (x + m - 1) // m * m


def _cdiv(a, b):
    return -(-a // b)


def _vmem_capacity_bytes():
    try:
        return int(pltpu.get_tpu_info().vmem_capacity_bytes)
    except Exception:
        return 64 << 20          # conservative fallback (v7x per-core VMEM)


def _pick_hw_tile(hw, c, x_itemsize, o_itemsize, pipeline_budget_bytes,
                  max_lanes=32 * 1024):
    """Pick the lane tile T (multiple of 128) and the spatial grid size.

    * Double-buffered in+out footprint stays within `pipeline_budget_bytes`.
    * T is capped at `max_lanes` so the (2, T) f32 epilogue temporaries stay
      small and pipelining / megacore splitting are preserved.
    * At least two grid steps are produced whenever HW allows it (v7x's
      second TensorCore + actual DMA/compute overlap).
    """
    bytes_per_lane = 2 * c * x_itemsize + 2 * 2 * o_itemsize
    t = (pipeline_budget_bytes // bytes_per_lane) // 128 * 128
    t = max(128, min(t, max_lanes))

    hw_128 = _round_up(hw, 128)
    num_tiles = _cdiv(hw_128, t)
    if num_tiles < 2 and hw_128 > 128:
        num_tiles = 2
    # Rebalance so tiles are roughly equal (small ragged tail).
    t = max(128, min(t, _round_up(_cdiv(hw_128, num_tiles), 128)))
    num_tiles = _cdiv(hw, t)     # grid over the *unpadded* HW
    return t, num_tiles


def disparity_prediction(x_nchw, weight, bias, *, pipeline_budget_bytes=None):
    """x_nchw: (N, C, H, W); weight: (2, C); bias: (2,).  Returns (N, 2, H, W)."""
    N, C, H, W = x_nchw.shape
    HW = H * W
    out_dtype = x_nchw.dtype
    x_itemsize = jnp.dtype(x_nchw.dtype).itemsize
    o_itemsize = jnp.dtype(out_dtype).itemsize

    vmem_cap = _vmem_capacity_bytes()
    if pipeline_budget_bytes is None:
        # 128-MiB VMEM parts (v5e/v6e) can afford longer DMA rows when C is
        # large; keep the budget tighter on 64-MiB v7x.
        pipeline_budget_bytes = (24 << 20) if vmem_cap > (64 << 20) else (12 << 20)

    T, num_tiles = _pick_hw_tile(HW, C, x_itemsize, o_itemsize,
                                 pipeline_budget_bytes)

    # Free, contiguous reshape; no pad / slice HBM round trip.  Pallas clamps
    # the ragged final lane-block on read and masks it on write.
    x = x_nchw.reshape(N, C, HW)
    w = weight.reshape(2, C).astype(x_nchw.dtype)
    b = bias.reshape(2, 1).astype(jnp.float32)

    # Scoped-VMEM request: double-buffered in/out tiles + resident weights /
    # bias + headroom for the (2, T) f32 epilogue temporaries.
    buf_bytes = (2 * C * T * x_itemsize          # double-buffered x tile
                 + 2 * 2 * T * o_itemsize        # double-buffered out tile
                 + 2 * 2 * C * x_itemsize        # weights
                 + 2 * 2 * 4)                    # bias
    interm_bytes = 8 * 2 * T * 4                 # (2, T) f32 temporaries
    need = buf_bytes + interm_bytes + (4 << 20)
    vmem_limit = int(min(max(need, 16 << 20), max(16 << 20, vmem_cap // 2)))

    cost = pl.CostEstimate(
        flops=4 * N * HW * C + 8 * N * HW,
        transcendentals=2 * N * HW,
        bytes_accessed=(N * C * HW * x_itemsize
                        + N * 2 * HW * o_itemsize
                        + 2 * C * x_itemsize + 2 * 4),
    )

    out = pl.pallas_call(
        _disparity_kernel,
        out_shape=jax.ShapeDtypeStruct((N, 2, HW), out_dtype),
        grid_spec=pltpu.PrefetchScalarGridSpec(
            num_scalar_prefetch=0,
            grid=(N, num_tiles),
            in_specs=[
                pl.BlockSpec((1, C, T), lambda i, j: (i, 0, j)),
                # Constant index maps -> weights/bias stay resident in VMEM.
                pl.BlockSpec((2, C), lambda i, j: (0, 0)),
                pl.BlockSpec((2, 1), lambda i, j: (0, 0)),
            ],
            out_specs=pl.BlockSpec((1, 2, T), lambda i, j: (i, 0, j)),
        ),
        compiler_params=pltpu.CompilerParams(
            dimension_semantics=("parallel", "parallel"),
            vmem_limit_bytes=vmem_limit,
        ),
        cost_estimate=cost,
    )(x, w, b)

    return out.reshape(N, 2, H, W)


def _reference(x, weight, bias):
    return jax.nn.sigmoid(
        jnp.einsum("oc,nchw->nohw", weight, x) + bias[None, :, None, None]
    ) * 0.3


if __name__ == "__main__":
    key = jax.random.PRNGKey(0)

    # Case 1: HW = 256 (multiple of 128) -> two balanced lane tiles, grid (2, 2).
    k_x, k_w, k_b, key = (*jax.random.split(key, 3), key)
    N, C, H, W = 2, 4, 16, 16
    x = jax.random.normal(k_x, (N, C, H, W), dtype=jnp.float32)
    weight = jax.random.normal(k_w, (2, C), dtype=jnp.float32) * 0.1
    bias = jax.random.normal(k_b, (2,), dtype=jnp.float32) * 0.1

    out = jax.block_until_ready(disparity_prediction(x, weight, bias))
    ref = _reference(x, weight, bias)
    assert out.shape == (N, 2, H, W)
    assert jnp.allclose(out, ref, atol=1e-5, rtol=1e-5)

    # Case 2: HW = 81 (not a multiple of 128) -> exercises the ragged
    # final-block path (clamped reads / masked writes, no wrapper pad/slice).
    k_x2, k_w2, k_b2 = jax.random.split(jax.random.PRNGKey(1), 3)
    N2, C2, H2, W2 = 1, 3, 9, 9
    x2 = jax.random.normal(k_x2, (N2, C2, H2, W2), dtype=jnp.float32)
    weight2 = jax.random.normal(k_w2, (2, C2), dtype=jnp.float32) * 0.1
    bias2 = jax.random.normal(k_b2, (2,), dtype=jnp.float32) * 0.1

    out2 = jax.block_until_ready(disparity_prediction(x2, weight2, bias2))
    ref2 = _reference(x2, weight2, bias2)
    assert out2.shape == (N2, 2, H2, W2)
    assert jnp.allclose(out2, ref2, atol=1e-5, rtol=1e-5)

    print("KERNEL_OK")
</pallas_src>

<mosaic_0001>
module attributes {stable_mosaic.version = 11 : i64} {
  func.func @_disparity_kernel(%arg0: i32, %arg1: i32, %arg2: memref<1x4x128xf32, #tpu.memory_space<vmem>>, %arg3: memref<2x4xf32, #tpu.memory_space<vmem>>, %arg4: memref<2x1xf32, #tpu.memory_space<vmem>>, %arg5: memref<1x2x128xf32, #tpu.memory_space<vmem>>) attributes {dimension_semantics = [#tpu.dimension_semantics<parallel>, #tpu.dimension_semantics<parallel>], iteration_bounds = array<i64: 2, 2>, scalar_prefetch = 0 : i64, scratch_operands = 0 : i64, tpu.core_type = #tpu.core_type<tc>, window_params = [{transform_indices = @transform_0, window_bounds = array<i64: 1, 4, 128>}, {pipeline_mode = #tpu.pipeline_mode<synchronous>, transform_indices = @transform_1, window_bounds = array<i64: 2, 4>}, {pipeline_mode = #tpu.pipeline_mode<synchronous>, transform_indices = @transform_2, window_bounds = array<i64: 2, 1>}, {transform_indices = @transform_3, window_bounds = array<i64: 1, 2, 128>}]} {
    %c0 = arith.constant 0 : index
    %c0_0 = arith.constant 0 : index
    %c0_1 = arith.constant 0 : index
    %0 = vector.load %arg2[%c0, %c0_0, %c0_1] : memref<1x4x128xf32, #tpu.memory_space<vmem>>, vector<1x4x128xf32>
    %1 = vector.shape_cast %0 : vector<1x4x128xf32> to vector<4x128xf32>
    %c0_2 = arith.constant 0 : index
    %c0_3 = arith.constant 0 : index
    %2 = vector.load %arg3[%c0_2, %c0_3] : memref<2x4xf32, #tpu.memory_space<vmem>>, vector<2x4xf32>
    %cst = arith.constant dense<0.000000e+00> : vector<2x128xf32>
    %3 = tpu.matmul %2, %1, %cst {dimension_numbers = #tpu.dot_dimension_numbers<[1], [0], [0], [1], [0, 0, 1, 1], [], []>} : vector<2x4xf32>, vector<4x128xf32>, vector<2x128xf32> -> vector<2x128xf32>
    %c0_4 = arith.constant 0 : index
    %c0_5 = arith.constant 0 : index
    %4 = vector.load %arg4[%c0_4, %c0_5] : memref<2x1xf32, #tpu.memory_space<vmem>>, vector<2x1xf32>
    %5 = vector.broadcast %4 : vector<2x1xf32> to vector<2x128xf32>
    %6 = arith.addf %3, %5 : vector<2x128xf32>
    %7 = arith.negf %6 : vector<2x128xf32>
    %8 = math.exp %7 : vector<2x128xf32>
    %cst_6 = arith.constant 1.000000e+00 : f32
    %9 = vector.broadcast %cst_6 : f32 to vector<2x128xf32>
    %10 = arith.addf %9, %8 : vector<2x128xf32>
    %11 = arith.divf %9, %10 : vector<2x128xf32>
    %cst_7 = arith.constant 3.000000e-01 : f32
    %12 = vector.broadcast %cst_7 : f32 to vector<2x128xf32>
    %13 = arith.mulf %11, %12 : vector<2x128xf32>
    %c0_8 = arith.constant 0 : index
    %c0_9 = arith.constant 0 : index
    %c0_10 = arith.constant 0 : index
    %14 = vector.load %arg5[%c0_8, %c0_9, %c0_10] : memref<1x2x128xf32, #tpu.memory_space<vmem>>, vector<1x2x128xf32>
    %15 = vector.shape_cast %14 : vector<1x2x128xf32> to vector<2x128xf32>
    %16 = vector.shape_cast %13 : vector<2x128xf32> to vector<1x2x128xf32>
    tpu.vector_store %arg5[%c0_8, %c0_9, %c0_10], %16 {strides = array<i32>} : memref<1x2x128xf32, #tpu.memory_space<vmem>>, vector<1x2x128xf32>,
    return
  }
  func.func @transform_0(%arg0: i32, %arg1: i32) -> (i32, i32, i32) {
    %c0_i32 = arith.constant 0 : i32
    %c0_i32_0 = arith.constant 0 : i32
    return %arg0, %c0_i32, %arg1 : i32, i32, i32
  }
  func.func @transform_1(%arg0: i32, %arg1: i32) -> (i32, i32) {
    %c0_i32 = arith.constant 0 : i32
    %c0_i32_0 = arith.constant 0 : i32
    %c0_i32_1 = arith.constant 0 : i32
    return %c0_i32, %c0_i32_0 : i32, i32
  }
  func.func @transform_2(%arg0: i32, %arg1: i32) -> (i32, i32) {
    %c0_i32 = arith.constant 0 : i32
    %c0_i32_0 = arith.constant 0 : i32
    %c0_i32_1 = arith.constant 0 : i32
    return %c0_i32, %c0_i32_0 : i32, i32
  }
  func.func @transform_3(%arg0: i32, %arg1: i32) -> (i32, i32, i32) {
    %c0_i32 = arith.constant 0 : i32
    %c0_i32_0 = arith.constant 0 : i32
    return %arg0, %c0_i32, %arg1 : i32, i32, i32
  }
}

</mosaic_0001>

<bundles_post_ra>
// kernel: tpu_custom_call.1
= control target key start
LH: loop header
LB: loop body
LE: loop exit
PB: predicated region body
PF: predicated region fallthrough
CT: control target
= control target key end

     0   :  { %8 = vsyncpa [#allocation3], 0  ;;  %s866_s0 = inlined_call_operand.hbm [shape: f32[2,4,256], index: 0, kind: input, shape index: {}]   ;;  %s867_s1 = inlined_call_operand.vmem [shape: f32[2,4], index: 1, kind: input, shape index: {}]   ;;  %s868_s2 = inlined_call_operand.vmem [shape: f32[2,1], index: 2, kind: input, shape index: {}]   ;;  %s869_s3 = inlined_call_operand.hbm [shape: f32[2,2,256], index: 3, kind: output, shape index: {}]  }
   0x1   :  { %10 = vsyncpa [#allocation3 + $0x1], 0 }
   0x2   :  { %11 = vsyncpa [#allocation4], 0 }
   0x3   :  { %13 = vsyncpa [#allocation4 + $0x1], 0  ;;  %s665_s12 = smov 0   ;;  %s667_s13 = smov 0  }
   0x4   :  { %s669_s14 = smov 0   ;;  %s671_s15 = smov 0  }
   0x5   :  { %s673_s16 = smov 0   ;;  %s675_s17 = smov 0  }
   0x6   :  { %s677_s18 = smov 0   ;;  %s679_s19 = smov 0  }
   0x7 LB: > { %s399_s20 = sadd.s32 4294967295, %s638_s19   ;;  %s400_s21 = sadd.s32 4294967294, %s638_s19   ;;  %s638_s19 = sphi %s679_s19, %s19_s19   ;;  %s634_s18 = sphi %s677_s18, %s886_s18   ;;  %s630_s17 = sphi %s675_s17, %s885_s17   ;;  %s626_s16 = sphi %s673_s16, %s884_s16   ;;  %s622_s15 = sphi %s671_s15, %s883_s15   ;;  %s618_s14 = sphi %s669_s14, %s882_s14   ;;  %s614_s13 = sphi %s667_s13, %s881_s13   ;;  %s610_s12 = sphi %s665_s12, %s880_s12  }
   0x8   : > { %s28_s22 = sadd.s32 1, %s630_s17  ;;  %s31_s23 = sadd.s32 1, %s634_s18 }
   0x9   : > { %p29_p0 = scmp.ge.s32.totalorder %s28_s22, 2  ;;  %s40_s24 = sadd.s32 1, %s618_s14 }
   0xa   : > { %p47_p1 = scmp.ne.s32.totalorder %s618_s14, %s614_s13  ;;  %p48_p2 = scmp.eq.s32.totalorder %s638_s19, 0 }
   0xb   : > { %s888_s22 = smov (%p29_p0, %s28_s22), 0  ;;  %s890_s23 = smov (!%p29_p0, %s31_s23), %s634_s18 }
   0xc   : > { %s36_s25 = ssub.s32 %s630_s17, %s888_s22  ;;  %p718_p3 = por %p48_p2, %p47_p1 }
   0xd   : > { %p33_p4 = scmp.ge.s32.totalorder %s890_s23, 2  ;;  %p53_p5 = scmp.ne.s32.totalorder %s614_s13, %s610_s12 }
   0xe   : > { %p54_p6 = scmp.eq.s32.totalorder %s399_s20, 0  ;;  %p121_p7 = scmp.eq.s32.totalorder %s399_s20, 3 }
   0xf   : > { %s892_s23 = smov (%p33_p4, %s890_s23), 0  ;;  %p127_p10 = scmp.eq.s32.totalorder %s400_s21, 3 }
  0x10   : > { %p726_p8 = por %p54_p6, %p53_p5  ;;  %p730_p9 = por %p121_p7, %p47_p1 }
  0x11   : > { %s35_s29 = ssub.s32 %s634_s18, %s892_s23  ;;  %p736_p12 = por %p127_p10, %p53_p5 }
  0x12   : > { %s873_s28 = scalar_select %p730_p9, 1, 0 }
  0x13   : > { %s37_s30 = sor.u32 %s36_s25, %s35_s29  ;;  %p436_p13 = scmp.lt.s32.totalorder %s638_s19, 4 }
  0x14   : > { %p38_p11 = scmp.eq.s32.totalorder %s37_s30, 0  ;;  %s153_s5 = sand.u32 1, %s618_s14  }
  0x15   : > { %s874_s4 = scalar_select %p736_p12, 1, 0 }
  0x16   : > { %s743_s6 = scalar_select %p38_p11, %s618_s14, %s40_s24  }
  0x17   : > { %s403_s7 = sshll.u32 %s153_s5, 2  ;;  %s404_s8 = sshll.u32 %s634_s18, 1 }
  0x18   : > { %s162_s9 = sadd.s32 %s630_s17, %s404_s8  ;;  %s157_s10 = scalar_lea.vmem [#allocation2], %s403_s7 }
  0x19   : > { %s166_s11 = sshll.u32 %s157_s10, 4  ;;  %s405_s20 = sshll.u32 %s162_s9, 6  ;;  %s747_s11 = int_to_ptr.vmem [resolvable:$true] %s166_s11 }
  0x1a   : > { %s752_s29 = scalar_lea.hbm %s866_s0, %s405_s20  ;;  %p756_p0 = pnand %p436_p13, %p718_p3 }
  0x1b   : > { %s154_s30 = scalar_lea.sflag [#allocation3], %s153_s5  ;;  %s510_s7 = scalar_lea.hbm %s752_s29, 64 }
  0x1c   : > { %p511_p4 = scmp.ne.s32.totalorder %s752_s29, %s510_s7  ;;  %p512_p5 = pneg %p756_p0 }
  0x1d   : > { %s515_s9 = scalar_lea.hbm %s866_s0, 256  ;;  %p516_p3 = scmp.lt.u32.totalorder %s752_s29, %s866_s0 }
  0x1e   : > { %p513_p6 = pnand %p512_p5, %p511_p4  ;;  %p517_p10 = scmp.lt.u32.totalorder %s515_s9, %s510_s7 }
  0x1f   : > { %p519_p13 = scmp.lt.u32.totalorder %s510_s7, %s752_s29 }
  0x20   : > { %p514_p7 = pneg %p513_p6  ;;  %p518_p11 = por %p517_p10, %p516_p3 }
  0x22   : > { %p520_p1 = por %p519_p13, %p518_p11 }
  0x24   : > { %p521_p2 = pnand %p520_p1, %p514_p7 }
  0x26   : > { %524 = shalt.err (!%p521_p2)
}
  0x27   : > { %s525_s5 = scalar_lea.vmem %s747_s11, 64  ;;  %s640_s21 = smov [#allocation2]  }
  0x28   : > { %p526_p4 = scmp.ne.s32.totalorder %s747_s11, %s525_s5  ;;  %s530_s25 = sshll.u32 %s640_s21, 4  ;;  %s531_s25 = int_to_ptr.vmem [resolvable:$false] %s530_s25 }
  0x29   : > { %s532_s26 = scalar_lea.vmem %s531_s25, 128  ;;  %p533_p9 = scmp.lt.s32.totalorder %s747_s11, %s531_s25 }
  0x2a   : > { %p528_p6 = pnand %p526_p4, %p512_p5  ;;  %p534_p3 = scmp.lt.s32.totalorder %s532_s26, %s525_s5 }
  0x2c   : > { %p529_p12 = pneg %p528_p6  ;;  %p535_p10 = por %p534_p3, %p533_p9 }
  0x2e   : > { %p536_p11 = pnand %p535_p10, %p529_p12 }
  0x30   : > { %539 = shalt.err (!%p536_p11)
}
  0x31   : > { %431 = dma.hbm_to_vmem [thread:$0]  (!%p756_p0), %s752_s29, 64, %s747_s11, %s154_s30  }
  0x32   : > { %p876_p1 = scmp.lt.s32.totalorder %s638_s19, 5  ;;  %p877_p2 = scmp.ge.s32.totalorder %s638_s19, 1 }
  0x34   : > { %p172_p5 = pnand %p877_p2, %p876_p1 }
  0x35   : > { %s792_s7 = sand.u32 (!%p172_p5), 1, %s614_s13  }
  0x36   : > { %175 = sbr.rel (%p172_p5) target bundleno = 321 (0x141), region = 32  ;;  %s407_s8 = sshll.u32 (!%p172_p5), %s792_s7, 2 }
  0x37   : > { %s178_s9 = scalar_lea.sflag (!%p172_p5), [#allocation3], %s792_s7  ;;  %s181_s10 = scalar_lea.vmem (!%p172_p5), [#allocation2], %s407_s8 }
  0x3d   : > { %601 = dma.done.wait (%p726_p8), %s178_s9, 64  }
  0x3e   : > { %603 = vsyncadd (%p726_p8), %s178_s9, 4294967232  ;;  %v641_v0 = vmov 0.0   ;;  %vm642_vm0 = vmmov 0   ;;  %v643_v1 = vmov 0   ;;  %vm216_vm1 = vcmask 1043456   ;;  %s408_s27 = sshll.u32 %s792_s7, 1 }
  0x3f   : > { %419 = vmatprep.subr.mxu0 %v641_v0  ;;  %421 = vmatprep.mubr.msk.f32.mxu0 %vm642_vm0, %v641_v0  ;;  %vm212_vm2 = vcmask 31744   ;;  %v204_v2 = vld [vmem:[%s181_s10] sm:$0xf]  ;;  %s413_s20 = sshll.u32 %s626_s16, 1  ;;  %s203_s25 = scalar_lea.vmem [#allocation5], %s408_s27 }
  0x40   : > { %505 = vset.pattern.permute.xlu0 %v643_v1  ;;  %v205_v3 = vld [vmem:[%s867_s1] sm:$0x3]  ;;  %420 = vmatpush3.msk.msra.mxu0 %vm216_vm1, %v204_v2  ;;  %s310_s5 = sadd.s32 %s622_s15, %s413_s20  ;;  %s314_s26 = sshll.u32 %s203_s25, 4  ;;  %s814_s26 = int_to_ptr.vmem [resolvable:$true] %s314_s26 }
  0x41   : > { %v206_v4 = vld [vmem:[%s868_s2] sm:$0x3]  ;;  %422 = vmatmul.mubr.msk.f32.vlgmr.msra.gmra.mrb[0].mxu0 %vm212_vm2, %v205_v3  ;;  %s414_s21 = sshll.u32 %s310_s5, 5  ;;  %s299_s11 = scalar_lea.sflag [#allocation4], %s792_s7 }
  0x42   : > { %209 = vperm.xlu0 %505, %v206_v4   ;;  %s812_s10 = scalar_lea.hbm %s869_s3, %s414_s21  ;;  %s540_s29 = scalar_lea.vmem %s814_s26, 32 }
  0x43   : > { %p541_p8 = scmp.ne.s32.totalorder %s814_s26, %s540_s29  ;;  %p878_p9 = scmp.ne.s32.totalorder %s873_s28, 0 }
  0x44   : > { %s644_s15 = smov [#allocation5]  }
  0x45   : > { %p542_p12 = pnand %p541_p8, %p878_p9  ;;  %s544_s16 = sshll.u32 %s644_s15, 4  ;;  %s545_s16 = int_to_ptr.vmem [resolvable:$false] %s544_s16 }
  0x46   : > { %s546_s24 = scalar_lea.vmem %s545_s16, 64  ;;  %p547_p7 = scmp.lt.s32.totalorder %s814_s26, %s545_s16 }
  0x47   : > { %p543_p0 = pneg %p542_p12  ;;  %p548_p13 = scmp.lt.s32.totalorder %s546_s24, %s540_s29 }
  0x49   : > { %p549_p4 = por %p548_p13, %p547_p7 }
  0x4b   : > { %p550_p6 = pnand %p549_p4, %p543_p0 }
  0xc1   : > { %v210_v5 = vpop.permute.xlu0 %209 }
 0x114   : > { %v286_v6 = vpop.f32.mrb[0].mxu0 }
 0x115   : > { %v287_v7 = vadd.f32 %v286_v6, %v210_v5  ;;  %v423_v8 = vpop.f32.mrb[1].mxu0 }
 0x117   : > { %v411_v9 = vmul.f32 -1.442695, %v287_v7 }
 0x119   : > { %506 = vpow2.f32 %v411_v9 }
 0x123   : > { %v507_v10 = vpop.eup %506 }
 0x124   : > { %v293_v11 = vadd.f32 1.0, %v507_v10 }
 0x126   : > { %508 = vrcp.f32 %v293_v11 }
 0x130   : > { %v509_v12 = vpop.eup %508 }
 0x131   : > { %v296_v13 = vmul.f32 0.3, %v509_v12 }
 0x133   : > { %297 = vst [vmem:[%s203_s25] sm:$0x3] %v296_v13 }
 0x134   : > { %553 = shalt.err (!%p550_p6)
}
 0x135   : > { %s554_s7 = scalar_lea.hbm %s812_s10, 32  ;;  %s558_s20 = scalar_lea.hbm %s869_s3, 128 }
 0x136   : > { %p555_p3 = scmp.ne.s32.totalorder %s812_s10, %s554_s7  ;;  %p559_p1 = scmp.lt.u32.totalorder %s812_s10, %s869_s3 }
 0x137   : > { %p560_p2 = scmp.lt.u32.totalorder %s558_s20, %s554_s7  ;;  %p562_p8 = scmp.lt.u32.totalorder %s554_s7, %s812_s10 }
 0x138   : > { %p556_p10 = pnand %p555_p3, %p878_p9 }
 0x139   : > { %p561_p5 = por %p560_p2, %p559_p1 }
 0x13a   : > { %p557_p11 = pneg %p556_p10 }
 0x13b   : > { %p563_p12 = por %p562_p8, %p561_p5 }
 0x13d   : > { %p564_p0 = pnand %p563_p12, %p557_p11 }
 0x13f   : > { %567 = shalt.err (!%p564_p0)
}
 0x140   : > { %426 = dma.vmem_to_hbm [thread:$0]  (%p878_p9), %s814_s26, 32, %s812_s10, %s299_s11  }
 0x141 PF: > { %p437_p7 = scmp.ge.s32.totalorder %s638_s19, 2  ;;  %s326_s25 = sand.u32 1, %s610_s12  }
 0x142   : > { %p879_p13 = scmp.ne.s32.totalorder %s874_s4, 0  ;;  %s327_s8 = scalar_lea.sflag [#allocation4], %s326_s25 }
 0x144   : > { %p433_p4 = pnand %p437_p7, %p879_p13 }
 0x146   : > { %605 = dma.done.wait (!%p433_p4), %s327_s8, 32  }
 0x147   : > { %607 = vsyncadd (!%p433_p4), %s327_s8, 4294967264  ;;  %s19_s19 = sadd.s32 1, %s638_s19   ;;  %s880_s12 = smov %s614_s13 }
 0x148   : > { %p16_p6 = scmp.ge.s32.totalorder %s19_s19, 6   ;;  %s881_s13 = smov %s618_s14 }
 0x149   : > { %s882_s14 = smov %s743_s6  ;;  %s883_s15 = smov %s630_s17 }
 0x14a   : > { %s884_s16 = smov %s634_s18  ;;  %s885_s17 = smov %s888_s22 }
 0x14b   : > { %s886_s18 = smov %s892_s23  ;;  %18 = sbr.rel (!%p16_p6) target bundleno = 7 (0x7), region = 77 }
 0x152   :  { %332 = vsyncpa [#allocation3], 1 }
 0x153   :  { %334 = vsyncpa [#allocation3 + $0x1], 1 }
 0x154   :  { %335 = vsyncpa [#allocation4], 1 }
 0x155   :  { %337 = vsyncpa [#allocation4 + $0x1], 1 }

</bundles_post_ra>
